<compile_context>
chip_gen: v5e
topology: v5e:2x2
jax: 0.10.0
libtpu: 0.0.40
codegen_flags: <defaults>
</compile_context>

<pallas_src>
import functools

import jax
import jax.numpy as jnp
from jax.experimental import pallas as pl
from jax.experimental.pallas import tpu as pltpu

BN_EPS = 1e-5
GUMBEL_EPS = 1e-8


def _round_up(v, m):
    return (v + m - 1) // m * m


def _mask_c_kernel(x_ref, w1_ref, gamma_ref, beta_ref, w2_ref, b2_ref, u_ref,
                   hard_ref, soft_ref,
                   acc_ref, ctx_ref,
                   *, B, L, TB, TL, inv_len, inv_gate_eps):
    b = pl.program_id(0)
    l = pl.program_id(1)
    nb = pl.num_programs(0)
    nl = pl.num_programs(1)
    C = acc_ref.shape[1]
    n_chunks = TL // 128

    @pl.when(l == 0)
    def _init():
        acc_ref[...] = jnp.zeros_like(acc_ref)

    # --- Streaming pooled-sum: 128-lane chunks accumulated with plain VPU adds into a
    # lane-resident (TB, C, 128) accumulator (no per-step XLU reduce).

    @pl.when(l != nl - 1)
    def _full_tile():          # interior tiles are always fully in bounds
        for k in range(n_chunks):
            acc_ref[...] += x_ref[:, :, k * 128:(k + 1) * 128].astype(jnp.float32)

    @pl.when(l == nl - 1)
    def _tail_tile():          # ragged last tile: mask lanes >= L (no wrapper pad)
        lane = jax.lax.broadcasted_iota(jnp.int32, (TB, C, 128), 2)
        base = l * TL
        for k in range(n_chunks):
            v = x_ref[:, :, k * 128:(k + 1) * 128].astype(jnp.float32)
            valid = (base + k * 128 + lane) < L
            acc_ref[...] += jnp.where(valid, v, 0.0)

    @pl.when(l == nl - 1)
    def _store_context():      # single cross-lane reduce per batch tile -> pooled mean
        ctx_ref[b] = jnp.sum(acc_ref[...], axis=-1) * inv_len

    @pl.when(jnp.logical_and(l == nl - 1, b == nb - 1))
    def _finalize():
        context = ctx_ref[...].reshape(-1, C)[:B]                 # (B, C) pooled means

        # 1x1 conv #1 (no bias) == matmul on pooled channel vectors.
        h = jnp.dot(context, w1_ref[...], preferred_element_type=jnp.float32)

        # BatchNorm1d, training-mode batch statistics (biased variance).
        mu = jnp.mean(h, axis=0, keepdims=True)
        var = jnp.mean((h - mu) ** 2, axis=0, keepdims=True)
        h = gamma_ref[...] * (h - mu) * jax.lax.rsqrt(var + BN_EPS) + beta_ref[...]

        h = jnp.maximum(h, 0.0)                                    # ReLU

        # 1x1 conv #2 (bias=True).
        logits = (jnp.dot(h, w2_ref[...], preferred_element_type=jnp.float32)
                  + b2_ref[...])                                   # (B, Co)

        # Gumbel gate.
        u = u_ref[...]
        g = jnp.log(u + GUMBEL_EPS) - jnp.log(1.0 - u + GUMBEL_EPS)
        soft = jax.nn.sigmoid((logits + g) * inv_gate_eps)

        hard_ref[...] = (soft >= 0.5).astype(jnp.float32)
        soft_ref[...] = soft


def _choose_tiles(B, C, L, itemsize, max_block_bytes, max_tl=2048):
    """Pick (TB, TL): keep TL lane-dense (big contiguous DMA rows) and shrink the
    batch tile first so a single x block stays within max_block_bytes."""
    TL = min(_round_up(L, 128), max_tl)
    TB = max(1, min(B, max_block_bytes // (C * TL * itemsize)))
    while TB == 1 and C * TL * itemsize > max_block_bytes and TL > 128:
        TL = max(128, _round_up(TL // 2, 128))
    return TB, TL


def init_mask_c_params(key, inplanes, outplanes, fc_reduction=4):
    """Deterministic synthetic parameters (shapes match the PyTorch module)."""
    bottleneck = inplanes // fc_reduction
    k1, k2, k3 = jax.random.split(key, 3)
    # PyTorch conv weights are (out, in, 1); stored transposed as matmul matrices.
    w1 = jax.random.normal(k1, (inplanes, bottleneck), jnp.float32) * (
        1.0 / jnp.sqrt(jnp.float32(inplanes)))
    w2 = jax.random.normal(k2, (bottleneck, outplanes), jnp.float32) * (
        1.0 / jnp.sqrt(jnp.float32(bottleneck)))
    bound = 1.0 / float(bottleneck) ** 0.5
    b2 = jax.random.uniform(k3, (1, outplanes), jnp.float32, -bound, bound)
    gamma = jnp.ones((1, bottleneck), jnp.float32)   # BN weight init
    beta = jnp.zeros((1, bottleneck), jnp.float32)   # BN bias init
    return {"w1": w1, "gamma": gamma, "beta": beta, "w2": w2, "b2": b2}


def mask_c_forward(x, params, key, *, gate_eps=0.66667, max_block_bytes=4 << 20):
    """x: (B, C, L) float32, NCL like PyTorch Conv1d.  `key` drives the Gumbel noise.

    Returns (mask_c, prob_soft), each (B, Co, 1)."""
    B, C, L = x.shape
    Cb = params["w1"].shape[1]
    Co = params["w2"].shape[1]
    itemsize = jnp.dtype(x.dtype).itemsize

    TB, TL = _choose_tiles(B, C, L, itemsize, max_block_bytes)
    nb = pl.cdiv(B, TB)
    nl = pl.cdiv(L, TL)

    # Gumbel base noise: tiny (B, Co) uniform draw (B*Co*4 bytes of HBM, negligible
    # next to the x stream) generated once in the wrapper.
    u = jax.random.uniform(key, (B, Co), jnp.float32)

    kernel = functools.partial(
        _mask_c_kernel, B=B, L=L, TB=TB, TL=TL,
        inv_len=1.0 / float(L), inv_gate_eps=1.0 / float(gate_eps))

    # VMEM budget derived from the actual footprint (double-buffered x stream +
    # resident params/noise + scratch + outputs + headroom).
    x_block_bytes = TB * C * TL * itemsize
    const_bytes = (C * Cb + 2 * Cb + Cb * Co + Co + B * Co) * 4
    scratch_bytes = (TB * C * 128 + nb * TB * C) * 4
    out_bytes = 2 * B * Co * 4
    vmem_limit = int(2 * x_block_bytes + 2 * const_bytes + scratch_bytes
                     + 2 * out_bytes + (4 << 20))
    vmem_limit = max(vmem_limit, 16 << 20)

    cost = pl.CostEstimate(
        flops=int(2 * B * C * L + 2 * B * (C * Cb + Cb * Co)),
        transcendentals=int(4 * B * Co),
        bytes_accessed=int(B * C * L * itemsize + const_bytes + out_bytes),
    )

    hard, soft = pl.pallas_call(
        kernel,
        out_shape=(
            jax.ShapeDtypeStruct((B, Co), jnp.float32),   # mask_c (hard, ST fwd value)
            jax.ShapeDtypeStruct((B, Co), jnp.float32),   # prob_soft
        ),
        grid_spec=pltpu.PrefetchScalarGridSpec(
            num_scalar_prefetch=0,
            grid=(nb, nl),
            in_specs=[
                pl.BlockSpec((TB, C, TL), lambda b, l: (b, 0, l)),   # x stream
                pl.BlockSpec((C, Cb), lambda b, l: (0, 0)),          # w1
                pl.BlockSpec((1, Cb), lambda b, l: (0, 0)),          # bn gamma
                pl.BlockSpec((1, Cb), lambda b, l: (0, 0)),          # bn beta
                pl.BlockSpec((Cb, Co), lambda b, l: (0, 0)),         # w2
                pl.BlockSpec((1, Co), lambda b, l: (0, 0)),          # b2
                pl.BlockSpec((B, Co), lambda b, l: (0, 0)),          # uniform noise
            ],
            out_specs=(
                pl.BlockSpec((B, Co), lambda b, l: (0, 0)),
                pl.BlockSpec((B, Co), lambda b, l: (0, 0)),
            ),
            scratch_shapes=[
                pltpu.VMEM((TB, C, 128), jnp.float32),   # lane-resident partial sums
                pltpu.VMEM((nb, TB, C), jnp.float32),    # pooled means, all batch tiles
            ],
        ),
        compiler_params=pltpu.CompilerParams(
            # L axis is a reduction; B axis feeds full-batch BN stats in the
            # finalize step, so neither can be megacore-parallel in one kernel.
            dimension_semantics=("arbitrary", "arbitrary"),
            vmem_limit_bytes=vmem_limit,
        ),
        cost_estimate=cost,
    )(x, params["w1"], params["gamma"], params["beta"], params["w2"],
      params["b2"], u)

    return hard.reshape(B, Co, 1), soft.reshape(B, Co, 1)


def mask_c_reference(x, params, u, *, gate_eps=0.66667):
    """Pure-JAX reference using the same gumbel base noise u."""
    context = jnp.mean(x.astype(jnp.float32), axis=-1)               # (B, C)
    h = context @ params["w1"]
    mu = jnp.mean(h, axis=0, keepdims=True)
    var = jnp.mean((h - mu) ** 2, axis=0, keepdims=True)
    h = params["gamma"] * (h - mu) * jax.lax.rsqrt(var + BN_EPS) + params["beta"]
    h = jnp.maximum(h, 0.0)
    logits = h @ params["w2"] + params["b2"]
    g = jnp.log(u + GUMBEL_EPS) - jnp.log(1.0 - u + GUMBEL_EPS)
    soft = jax.nn.sigmoid((logits + g) / gate_eps)
    hard = (soft >= 0.5).astype(jnp.float32)
    return hard[..., None], soft[..., None]


if __name__ == "__main__":
    B, inplanes, L = 2, 32, 520        # L % 128 != 0 -> exercises the in-kernel tail mask
    outplanes, fc_reduction = 8, 4

    key = jax.random.PRNGKey(0)
    kx, kp, kg = jax.random.split(key, 3)

    x = jax.random.normal(kx, (B, inplanes, L), jnp.float32)
    params = init_mask_c_params(kp, inplanes, outplanes, fc_reduction)

    # Small max_block_bytes forces a multi-tile (b, l) grid even at demo sizes
    # (exercises init / accumulate / tail-mask / per-batch-tile context / finalize).
    mask_c, prob_soft = mask_c_forward(
        x, params, kg, max_block_bytes=inplanes * 256 * 4)
    jax.block_until_ready((mask_c, prob_soft))

    assert mask_c.shape == (B, outplanes, 1)
    assert prob_soft.shape == (B, outplanes, 1)
    # hard mask is binary and consistent with the soft probabilities
    assert bool(jnp.all((mask_c == 0.0) | (mask_c == 1.0)))
    assert bool(jnp.all((prob_soft >= 0.0) & (prob_soft <= 1.0)))
    assert bool(jnp.all((mask_c == 1.0) == (prob_soft >= 0.5)))

    # Cross-check against a pure-JAX reference using the same gumbel noise.
    u = jax.random.uniform(kg, (B, outplanes), jnp.float32)
    ref_hard, ref_soft = mask_c_reference(x, params, u)
    assert bool(jnp.all(jnp.abs(prob_soft - ref_soft) < 1e-2))

    print("KERNEL_OK")
</pallas_src>

<mosaic_0001>
module attributes {stable_mosaic.version = 11 : i64} {
  func.func @_mask_c_kernel(%arg0: i32, %arg1: i32, %arg2: memref<1x32x256xf32, #tpu.memory_space<vmem>>, %arg3: memref<32x8xf32, #tpu.memory_space<vmem>>, %arg4: memref<1x8xf32, #tpu.memory_space<vmem>>, %arg5: memref<1x8xf32, #tpu.memory_space<vmem>>, %arg6: memref<8x8xf32, #tpu.memory_space<vmem>>, %arg7: memref<1x8xf32, #tpu.memory_space<vmem>>, %arg8: memref<2x8xf32, #tpu.memory_space<vmem>>, %arg9: memref<2x8xf32, #tpu.memory_space<vmem>>, %arg10: memref<2x8xf32, #tpu.memory_space<vmem>>, %arg11: memref<1x32x128xf32, #tpu.memory_space<vmem>>, %arg12: memref<2x1x32xf32, #tpu.memory_space<vmem>>) attributes {dimension_semantics = [#tpu.dimension_semantics<arbitrary>, #tpu.dimension_semantics<arbitrary>], iteration_bounds = array<i64: 2, 3>, scalar_prefetch = 0 : i64, scratch_operands = 2 : i64, tpu.core_type = #tpu.core_type<tc>, window_params = [{transform_indices = @transform_0, window_bounds = array<i64: 1, 32, 256>}, {pipeline_mode = #tpu.pipeline_mode<synchronous>, transform_indices = @transform_1, window_bounds = array<i64: 32, 8>}, {pipeline_mode = #tpu.pipeline_mode<synchronous>, transform_indices = @transform_2, window_bounds = array<i64: 1, 8>}, {pipeline_mode = #tpu.pipeline_mode<synchronous>, transform_indices = @transform_3, window_bounds = array<i64: 1, 8>}, {pipeline_mode = #tpu.pipeline_mode<synchronous>, transform_indices = @transform_4, window_bounds = array<i64: 8, 8>}, {pipeline_mode = #tpu.pipeline_mode<synchronous>, transform_indices = @transform_5, window_bounds = array<i64: 1, 8>}, {pipeline_mode = #tpu.pipeline_mode<synchronous>, transform_indices = @transform_6, window_bounds = array<i64: 2, 8>}, {pipeline_mode = #tpu.pipeline_mode<synchronous>, transform_indices = @transform_7, window_bounds = array<i64: 2, 8>}, {pipeline_mode = #tpu.pipeline_mode<synchronous>, transform_indices = @transform_8, window_bounds = array<i64: 2, 8>}]} {
    %c0_i32 = arith.constant 0 : i32
    %0 = arith.cmpi eq, %arg1, %c0_i32 : i32
    %1 = arith.extui %0 : i1 to i32
    %c0_i32_0 = arith.constant 0 : i32
    %2 = arith.cmpi ne, %1, %c0_i32_0 : i32
    scf.if %2 {
      %cst = arith.constant 0.000000e+00 : f32
      %17 = vector.broadcast %cst : f32 to vector<1x32x128xf32>
      %c0 = arith.constant 0 : index
      %c0_8 = arith.constant 0 : index
      %c0_9 = arith.constant 0 : index
      %18 = vector.load %arg11[%c0, %c0_8, %c0_9] : memref<1x32x128xf32, #tpu.memory_space<vmem>>, vector<1x32x128xf32>
      tpu.vector_store %arg11[%c0, %c0_8, %c0_9], %17 {strides = array<i32>} : memref<1x32x128xf32, #tpu.memory_space<vmem>>, vector<1x32x128xf32>,
    } else {
    }
    %c2_i32 = arith.constant 2 : i32
    %3 = arith.cmpi ne, %arg1, %c2_i32 : i32
    %4 = arith.extui %3 : i1 to i32
    %c0_i32_1 = arith.constant 0 : i32
    %5 = arith.cmpi ne, %4, %c0_i32_1 : i32
    scf.if %5 {
      %c0 = arith.constant 0 : index
      %c0_8 = arith.constant 0 : index
      %c0_9 = arith.constant 0 : index
      %17 = vector.load %arg11[%c0, %c0_8, %c0_9] : memref<1x32x128xf32, #tpu.memory_space<vmem>>, vector<1x32x128xf32>
      %c0_10 = arith.constant 0 : index
      %c0_11 = arith.constant 0 : index
      %c0_12 = arith.constant 0 : index
      %18 = vector.load %arg2[%c0_10, %c0_11, %c0_12] : memref<1x32x256xf32, #tpu.memory_space<vmem>>, vector<1x32x128xf32>
      %19 = arith.addf %17, %18 : vector<1x32x128xf32>
      %c0_13 = arith.constant 0 : index
      %c0_14 = arith.constant 0 : index
      %c0_15 = arith.constant 0 : index
      %20 = vector.load %arg11[%c0_13, %c0_14, %c0_15] : memref<1x32x128xf32, #tpu.memory_space<vmem>>, vector<1x32x128xf32>
      tpu.vector_store %arg11[%c0_13, %c0_14, %c0_15], %19 {strides = array<i32>} : memref<1x32x128xf32, #tpu.memory_space<vmem>>, vector<1x32x128xf32>,
      %c0_16 = arith.constant 0 : index
      %c0_17 = arith.constant 0 : index
      %c0_18 = arith.constant 0 : index
      %21 = vector.load %arg11[%c0_16, %c0_17, %c0_18] : memref<1x32x128xf32, #tpu.memory_space<vmem>>, vector<1x32x128xf32>
      %c0_19 = arith.constant 0 : index
      %c0_20 = arith.constant 0 : index
      %c128 = arith.constant 128 : index
      %22 = vector.load %arg2[%c0_19, %c0_20, %c128] : memref<1x32x256xf32, #tpu.memory_space<vmem>>, vector<1x32x128xf32>
      %23 = arith.addf %21, %22 : vector<1x32x128xf32>
      %c0_21 = arith.constant 0 : index
      %c0_22 = arith.constant 0 : index
      %c0_23 = arith.constant 0 : index
      %24 = vector.load %arg11[%c0_21, %c0_22, %c0_23] : memref<1x32x128xf32, #tpu.memory_space<vmem>>, vector<1x32x128xf32>
      tpu.vector_store %arg11[%c0_21, %c0_22, %c0_23], %23 {strides = array<i32>} : memref<1x32x128xf32, #tpu.memory_space<vmem>>, vector<1x32x128xf32>,
    } else {
    }
    %c2_i32_2 = arith.constant 2 : i32
    %6 = arith.cmpi eq, %arg1, %c2_i32_2 : i32
    %7 = arith.extui %6 : i1 to i32
    %c0_i32_3 = arith.constant 0 : i32
    %8 = arith.cmpi ne, %7, %c0_i32_3 : i32
    scf.if %8 {
      %17 = tpu.iota {dimensions = array<i32: 2>} : vector<1x32x128xi32>
      %c256_i32 = arith.constant 256 : i32
      %18 = arith.muli %arg1, %c256_i32 : i32
      %c0 = arith.constant 0 : index
      %c0_8 = arith.constant 0 : index
      %c0_9 = arith.constant 0 : index
      %19 = vector.load %arg2[%c0, %c0_8, %c0_9] : memref<1x32x256xf32, #tpu.memory_space<vmem>>, vector<1x32x128xf32>
      %c0_i32_10 = arith.constant 0 : i32
      %20 = arith.addi %18, %c0_i32_10 : i32
      %21 = vector.broadcast %20 : i32 to vector<1x32x128xi32>
      %22 = arith.addi %21, %17 : vector<1x32x128xi32>
      %c520_i32 = arith.constant 520 : i32
      %23 = vector.broadcast %c520_i32 : i32 to vector<1x32x128xi32>
      %24 = arith.cmpi slt, %22, %23 : vector<1x32x128xi32>
      %c0_11 = arith.constant 0 : index
      %c0_12 = arith.constant 0 : index
      %c0_13 = arith.constant 0 : index
      %25 = vector.load %arg11[%c0_11, %c0_12, %c0_13] : memref<1x32x128xf32, #tpu.memory_space<vmem>>, vector<1x32x128xf32>
      %cst = arith.constant 0.000000e+00 : f32
      %26 = vector.broadcast %cst : f32 to vector<1x32x128xf32>
      %27 = arith.select %24, %19, %26 : vector<1x32x128xi1>, vector<1x32x128xf32>
      %28 = arith.addf %25, %27 : vector<1x32x128xf32>
      %c0_14 = arith.constant 0 : index
      %c0_15 = arith.constant 0 : index
      %c0_16 = arith.constant 0 : index
      %29 = vector.load %arg11[%c0_14, %c0_15, %c0_16] : memref<1x32x128xf32, #tpu.memory_space<vmem>>, vector<1x32x128xf32>
      tpu.vector_store %arg11[%c0_14, %c0_15, %c0_16], %28 {strides = array<i32>} : memref<1x32x128xf32, #tpu.memory_space<vmem>>, vector<1x32x128xf32>,
      %c0_17 = arith.constant 0 : index
      %c0_18 = arith.constant 0 : index
      %c128 = arith.constant 128 : index
      %30 = vector.load %arg2[%c0_17, %c0_18, %c128] : memref<1x32x256xf32, #tpu.memory_space<vmem>>, vector<1x32x128xf32>
      %c128_i32 = arith.constant 128 : i32
      %31 = arith.addi %18, %c128_i32 : i32
      %32 = vector.broadcast %31 : i32 to vector<1x32x128xi32>
      %33 = arith.addi %32, %17 : vector<1x32x128xi32>
      %c520_i32_19 = arith.constant 520 : i32
      %34 = vector.broadcast %c520_i32_19 : i32 to vector<1x32x128xi32>
      %35 = arith.cmpi slt, %33, %34 : vector<1x32x128xi32>
      %c0_20 = arith.constant 0 : index
      %c0_21 = arith.constant 0 : index
      %c0_22 = arith.constant 0 : index
      %36 = vector.load %arg11[%c0_20, %c0_21, %c0_22] : memref<1x32x128xf32, #tpu.memory_space<vmem>>, vector<1x32x128xf32>
      %cst_23 = arith.constant 0.000000e+00 : f32
      %37 = vector.broadcast %cst_23 : f32 to vector<1x32x128xf32>
      %38 = arith.select %35, %30, %37 : vector<1x32x128xi1>, vector<1x32x128xf32>
      %39 = arith.addf %36, %38 : vector<1x32x128xf32>
      %c0_24 = arith.constant 0 : index
      %c0_25 = arith.constant 0 : index
      %c0_26 = arith.constant 0 : index
      %40 = vector.load %arg11[%c0_24, %c0_25, %c0_26] : memref<1x32x128xf32, #tpu.memory_space<vmem>>, vector<1x32x128xf32>
      tpu.vector_store %arg11[%c0_24, %c0_25, %c0_26], %39 {strides = array<i32>} : memref<1x32x128xf32, #tpu.memory_space<vmem>>, vector<1x32x128xf32>,
    } else {
    }
    %c2_i32_4 = arith.constant 2 : i32
    %9 = arith.cmpi eq, %arg1, %c2_i32_4 : i32
    %10 = arith.extui %9 : i1 to i32
    %c0_i32_5 = arith.constant 0 : i32
    %11 = arith.cmpi ne, %10, %c0_i32_5 : i32
    scf.if %11 {
      %c0 = arith.constant 0 : index
      %c0_8 = arith.constant 0 : index
      %c0_9 = arith.constant 0 : index
      %17 = vector.load %arg11[%c0, %c0_8, %c0_9] : memref<1x32x128xf32, #tpu.memory_space<vmem>>, vector<1x32x128xf32>
      %cst = arith.constant dense<0.000000e+00> : vector<1x32xf32>
      %18 = vector.multi_reduction <add>, %17, %cst [2] : vector<1x32x128xf32> to vector<1x32xf32>
      %cst_10 = arith.constant 0.00192307692 : f32
      %19 = vector.broadcast %cst_10 : f32 to vector<1x32xf32>
      %20 = arith.mulf %18, %19 : vector<1x32xf32>
      %21 = arith.index_cast %arg0 : i32 to index
      %c0_11 = arith.constant 0 : index
      %c0_12 = arith.constant 0 : index
      %22 = vector.load %arg12[%21, %c0_11, %c0_12] : memref<2x1x32xf32, #tpu.memory_space<vmem>>, vector<1x1x32xf32>
      %23 = vector.shape_cast %22 : vector<1x1x32xf32> to vector<1x32xf32>
      %24 = vector.shape_cast %20 : vector<1x32xf32> to vector<1x1x32xf32>
      tpu.vector_store %arg12[%21, %c0_11, %c0_12], %24 {strides = array<i32>} : memref<2x1x32xf32, #tpu.memory_space<vmem>>, vector<1x1x32xf32>,
    } else {
    }
    %c2_i32_6 = arith.constant 2 : i32
    %12 = arith.cmpi eq, %arg1, %c2_i32_6 : i32
    %c1_i32 = arith.constant 1 : i32
    %13 = arith.cmpi eq, %arg0, %c1_i32 : i32
    %14 = arith.andi %12, %13 : i1
    %15 = arith.extui %14 : i1 to i32
    %c0_i32_7 = arith.constant 0 : i32
    %16 = arith.cmpi ne, %15, %c0_i32_7 : i32
    scf.if %16 {
      %c0 = arith.constant 0 : index
      %c0_8 = arith.constant 0 : index
      %c0_9 = arith.constant 0 : index
      %17 = vector.load %arg12[%c0, %c0_8, %c0_9] : memref<2x1x32xf32, #tpu.memory_space<vmem>>, vector<2x1x32xf32>
      %18 = vector.shape_cast %17 : vector<2x1x32xf32> to vector<2x32xf32>
      %c0_10 = arith.constant 0 : index
      %c0_11 = arith.constant 0 : index
      %19 = vector.load %arg3[%c0_10, %c0_11] : memref<32x8xf32, #tpu.memory_space<vmem>>, vector<32x8xf32>
      %cst = arith.constant dense<0.000000e+00> : vector<2x8xf32>
      %20 = tpu.matmul %18, %19, %cst {dimension_numbers = #tpu.dot_dimension_numbers<[1], [0], [0], [1], [0, 0, 1, 1], [], []>} : vector<2x32xf32>, vector<32x8xf32>, vector<2x8xf32> -> vector<2x8xf32>
      %cst_12 = arith.constant dense<0.000000e+00> : vector<8xf32>
      %21 = vector.multi_reduction <add>, %20, %cst_12 [0] : vector<2x8xf32> to vector<8xf32>
      %22 = vector.shape_cast %21 : vector<8xf32> to vector<1x8xf32>
      %cst_13 = arith.constant 2.000000e+00 : f32
      %23 = vector.broadcast %cst_13 : f32 to vector<1x8xf32>
      %24 = arith.divf %22, %23 : vector<1x8xf32>
      %25 = vector.broadcast %24 : vector<1x8xf32> to vector<2x8xf32>
      %26 = arith.subf %20, %25 : vector<2x8xf32>
      %27 = arith.mulf %26, %26 : vector<2x8xf32>
      %cst_14 = arith.constant dense<0.000000e+00> : vector<8xf32>
      %28 = vector.multi_reduction <add>, %27, %cst_14 [0] : vector<2x8xf32> to vector<8xf32>
      %29 = vector.shape_cast %28 : vector<8xf32> to vector<1x8xf32>
      %cst_15 = arith.constant 2.000000e+00 : f32
      %30 = vector.broadcast %cst_15 : f32 to vector<1x8xf32>
      %31 = arith.divf %29, %30 : vector<1x8xf32>
      %c0_16 = arith.constant 0 : index
      %c0_17 = arith.constant 0 : index
      %32 = vector.load %arg4[%c0_16, %c0_17] : memref<1x8xf32, #tpu.memory_space<vmem>>, vector<1x8xf32>
      %33 = vector.broadcast %24 : vector<1x8xf32> to vector<2x8xf32>
      %34 = arith.subf %20, %33 : vector<2x8xf32>
      %35 = vector.broadcast %32 : vector<1x8xf32> to vector<2x8xf32>
      %36 = arith.mulf %35, %34 : vector<2x8xf32>
      %cst_18 = arith.constant 9.99999974E-6 : f32
      %37 = vector.broadcast %cst_18 : f32 to vector<1x8xf32>
      %38 = arith.addf %31, %37 : vector<1x8xf32>
      %39 = math.rsqrt %38 : vector<1x8xf32>
      %40 = vector.broadcast %39 : vector<1x8xf32> to vector<2x8xf32>
      %41 = arith.mulf %36, %40 : vector<2x8xf32>
      %c0_19 = arith.constant 0 : index
      %c0_20 = arith.constant 0 : index
      %42 = vector.load %arg5[%c0_19, %c0_20] : memref<1x8xf32, #tpu.memory_space<vmem>>, vector<1x8xf32>
      %43 = vector.broadcast %42 : vector<1x8xf32> to vector<2x8xf32>
      %44 = arith.addf %41, %43 : vector<2x8xf32>
      %cst_21 = arith.constant 0.000000e+00 : f32
      %45 = vector.broadcast %cst_21 : f32 to vector<2x8xf32>
      %46 = arith.maximumf %44, %45 : vector<2x8xf32>
      %c0_22 = arith.constant 0 : index
      %c0_23 = arith.constant 0 : index
      %47 = vector.load %arg6[%c0_22, %c0_23] : memref<8x8xf32, #tpu.memory_space<vmem>>, vector<8x8xf32>
      %cst_24 = arith.constant dense<0.000000e+00> : vector<2x8xf32>
      %48 = tpu.matmul %46, %47, %cst_24 {dimension_numbers = #tpu.dot_dimension_numbers<[1], [0], [0], [1], [0, 0, 1, 1], [], []>} : vector<2x8xf32>, vector<8x8xf32>, vector<2x8xf32> -> vector<2x8xf32>
      %c0_25 = arith.constant 0 : index
      %c0_26 = arith.constant 0 : index
      %49 = vector.load %arg7[%c0_25, %c0_26] : memref<1x8xf32, #tpu.memory_space<vmem>>, vector<1x8xf32>
      %50 = vector.broadcast %49 : vector<1x8xf32> to vector<2x8xf32>
      %51 = arith.addf %48, %50 : vector<2x8xf32>
      %c0_27 = arith.constant 0 : index
      %c0_28 = arith.constant 0 : index
      %52 = vector.load %arg8[%c0_27, %c0_28] : memref<2x8xf32, #tpu.memory_space<vmem>>, vector<2x8xf32>
      %cst_29 = arith.constant 9.99999993E-9 : f32
      %53 = vector.broadcast %cst_29 : f32 to vector<2x8xf32>
      %54 = arith.addf %52, %53 : vector<2x8xf32>
      %55 = math.log %54 : vector<2x8xf32>
      %cst_30 = arith.constant 1.000000e+00 : f32
      %56 = vector.broadcast %cst_30 : f32 to vector<2x8xf32>
      %57 = arith.subf %56, %52 : vector<2x8xf32>
      %cst_31 = arith.constant 9.99999993E-9 : f32
      %58 = vector.broadcast %cst_31 : f32 to vector<2x8xf32>
      %59 = arith.addf %57, %58 : vector<2x8xf32>
      %60 = math.log %59 : vector<2x8xf32>
      %61 = arith.subf %55, %60 : vector<2x8xf32>
      %62 = arith.addf %51, %61 : vector<2x8xf32>
      %cst_32 = arith.constant 1.49999249 : f32
      %63 = vector.broadcast %cst_32 : f32 to vector<2x8xf32>
      %64 = arith.mulf %62, %63 : vector<2x8xf32>
      %65 = arith.negf %64 : vector<2x8xf32>
      %66 = math.exp %65 : vector<2x8xf32>
      %cst_33 = arith.constant 1.000000e+00 : f32
      %67 = vector.broadcast %cst_33 : f32 to vector<2x8xf32>
      %68 = arith.addf %67, %66 : vector<2x8xf32>
      %69 = arith.divf %67, %68 : vector<2x8xf32>
      %cst_34 = arith.constant 5.000000e-01 : f32
      %70 = vector.broadcast %cst_34 : f32 to vector<2x8xf32>
      %71 = arith.cmpf oge, %69, %70 : vector<2x8xf32>
      %72 = arith.extui %71 : vector<2x8xi1> to vector<2x8xi32>
      %73 = arith.sitofp %72 : vector<2x8xi32> to vector<2x8xf32>
      %c0_35 = arith.constant 0 : index
      %c0_36 = arith.constant 0 : index
      %74 = vector.load %arg9[%c0_35, %c0_36] : memref<2x8xf32, #tpu.memory_space<vmem>>, vector<2x8xf32>
      tpu.vector_store %arg9[%c0_35, %c0_36], %73 {strides = array<i32>} : memref<2x8xf32, #tpu.memory_space<vmem>>, vector<2x8xf32>,
      %c0_37 = arith.constant 0 : index
      %c0_38 = arith.constant 0 : index
      %75 = vector.load %arg10[%c0_37, %c0_38] : memref<2x8xf32, #tpu.memory_space<vmem>>, vector<2x8xf32>
      tpu.vector_store %arg10[%c0_37, %c0_38], %69 {strides = array<i32>} : memref<2x8xf32, #tpu.memory_space<vmem>>, vector<2x8xf32>,
    } else {
    }
    return
  }
  func.func @transform_0(%arg0: i32, %arg1: i32) -> (i32, i32, i32) {
    %c0_i32 = arith.constant 0 : i32
    %c0_i32_0 = arith.constant 0 : i32
    return %arg0, %c0_i32, %arg1 : i32, i32, i32
  }
  func.func @transform_1(%arg0: i32, %arg1: i32) -> (i32, i32) {
    %c0_i32 = arith.constant 0 : i32
    %c0_i32_0 = arith.constant 0 : i32
    %c0_i32_1 = arith.constant 0 : i32
    return %c0_i32, %c0_i32_0 : i32, i32
  }
  func.func @transform_2(%arg0: i32, %arg1: i32) -> (i32, i32) {
    %c0_i32 = arith.constant 0 : i32
    %c0_i32_0 = arith.constant 0 : i32
    %c0_i32_1 = arith.constant 0 : i32
    return %c0_i32, %c0_i32_0 : i32, i32
  }
  func.func @transform_3(%arg0: i32, %arg1: i32) -> (i32, i32) {
    %c0_i32 = arith.constant 0 : i32
    %c0_i32_0 = arith.constant 0 : i32
    %c0_i32_1 = arith.constant 0 : i32
    return %c0_i32, %c0_i32_0 : i32, i32
  }
  func.func @transform_4(%arg0: i32, %arg1: i32) -> (i32, i32) {
    %c0_i32 = arith.constant 0 : i32
    %c0_i32_0 = arith.constant 0 : i32
    %c0_i32_1 = arith.constant 0 : i32
    return %c0_i32, %c0_i32_0 : i32, i32
  }
  func.func @transform_5(%arg0: i32, %arg1: i32) -> (i32, i32) {
    %c0_i32 = arith.constant 0 : i32
    %c0_i32_0 = arith.constant 0 : i32
    %c0_i32_1 = arith.constant 0 : i32
    return %c0_i32, %c0_i32_0 : i32, i32
  }
  func.func @transform_6(%arg0: i32, %arg1: i32) -> (i32, i32) {
    %c0_i32 = arith.constant 0 : i32
    %c0_i32_0 = arith.constant 0 : i32
    %c0_i32_1 = arith.constant 0 : i32
    return %c0_i32, %c0_i32_0 : i32, i32
  }
  func.func @transform_7(%arg0: i32, %arg1: i32) -> (i32, i32) {
    %c0_i32 = arith.constant 0 : i32
    %c0_i32_0 = arith.constant 0 : i32
    %c0_i32_1 = arith.constant 0 : i32
    return %c0_i32, %c0_i32_0 : i32, i32
  }
  func.func @transform_8(%arg0: i32, %arg1: i32) -> (i32, i32) {
    %c0_i32 = arith.constant 0 : i32
    %c0_i32_0 = arith.constant 0 : i32
    %c0_i32_1 = arith.constant 0 : i32
    return %c0_i32, %c0_i32_0 : i32, i32
  }
}

</mosaic_0001>

<bundles_post_ra>
// kernel: tpu_custom_call.1
= control target key start
LH: loop header
LB: loop body
LE: loop exit
PB: predicated region body
PF: predicated region fallthrough
CT: control target
= control target key end

     0   :  { %s1292_s0 = inlined_call_operand.hbm [shape: f32[2,32,520], index: 0, kind: input, shape index: {}]   ;;  %s1293_s1 = inlined_call_operand.vmem [shape: f32[32,8], index: 1, kind: input, shape index: {}]   ;;  %s1294_s2 = inlined_call_operand.vmem [shape: f32[1,8], index: 2, kind: input, shape index: {}]   ;;  %s1295_s3 = inlined_call_operand.vmem [shape: f32[1,8], index: 3, kind: input, shape index: {}]   ;;  %s1296_s4 = inlined_call_operand.vmem [shape: f32[8,8], index: 4, kind: input, shape index: {}]   ;;  %s1297_s5 = inlined_call_operand.vmem [shape: f32[1,8], index: 5, kind: input, shape index: {}]   ;;  %s1298_s6 = inlined_call_operand.vmem [shape: f32[2,8], index: 6, kind: input, shape index: {}]   ;;  %s1299_s7 = inlined_call_operand.hbm [shape: f32[2,8], index: 7, kind: output, shape index: {0}]   ;;  %s1300_s8 = inlined_call_operand.hbm [shape: f32[2,8], index: 8, kind: output, shape index: {1}]  }
   0x1   :  { %1307 = sst [smem:[#allocation19_spill]] %s1299_s7 }
   0x2   :  { %1308 = sst [smem:[#allocation20_spill]] %s1300_s8 }
   0x3   :  { %14 = vsyncpa [#allocation5], 0 }
   0x4   :  { %16 = vsyncpa [#allocation5 + $0x1], 0 }
   0x5   :  { %17 = vsyncpa [#allocation6], 0 }
   0x6   :  { %18 = vsyncpa [#allocation9], 0  ;;  %s1082_s27 = smov 0   ;;  %s1084_s28 = smov 0  }
   0x7   :  { %s1086_s29 = smov 0   ;;  %s1088_s30 = smov 0  }
   0x8   :  { %s1090_s9 = smov 0   ;;  %s1092_s10 = smov 0  }
   0x9   :  { %s1094_s11 = smov 0   ;;  %s1096_s12 = smov 0  }
   0xa LB: > { %1309 = sst [smem:[#allocation13_spill]] %s1007_s29  ;;  %s33_s13 = sadd.s32 1, %s1019_s10  ;;  %s1027_s12 = sphi %s1096_s12, %s24_s12   ;;  %s1023_s11 = sphi %s1094_s11, %s1326_s11   ;;  %s1019_s10 = sphi %s1092_s10, %s1325_s10   ;;  %s1015_s9 = sphi %s1090_s9, %s1324_s9   ;;  %s1011_s30 = sphi %s1088_s30, %s1323_s30   ;;  %s1007_s29 = sphi %s1086_s29, %s1322_s29   ;;  %s1003_s28 = sphi %s1084_s28, %s1328_s28   ;;  %s999_s27 = sphi %s1082_s27, %s1327_s27  }
   0xb   : > { %1310 = sst [smem:[#allocation14_spill]] %s1019_s10  ;;  %p34_p0 = scmp.ge.s32.totalorder %s33_s13, 3 }
   0xc   : > { %1311 = sst [smem:[#allocation15_spill]] %s1023_s11  ;;  %s36_s14 = sadd.s32 1, %s1023_s11 }
   0xd   : > { %s1301_s15 = sadd.s32 4294967295, %s1027_s12   ;;  %p52_p1 = scmp.ne.s32.totalorder %s1007_s29, %s1003_s28 }
   0xe   : > { %s1330_s13 = smov (%p34_p0, %s33_s13), 0  ;;  %s1332_s14 = smov (!%p34_p0, %s36_s14), %s1023_s11 }
   0xf   : > { %1312 = sst [smem:[#allocation16_spill]] %s1330_s13  ;;  %s41_s16 = ssub.s32 %s1019_s10, %s1330_s13 }
  0x10   : > { %p53_p2 = scmp.eq.s32.totalorder %s1027_s12, 0  ;;  %p38_p3 = scmp.ge.s32.totalorder %s1332_s14, 2 }
  0x11   : > { %p58_p4 = scmp.ne.s32.totalorder %s1003_s28, %s999_s27  ;;  %p59_p6 = scmp.eq.s32.totalorder %s1301_s15, 0 }
  0x12   : > { %p54_p5 = por %p53_p2, %p52_p1  ;;  %s1334_s14 = smov (%p38_p3, %s1332_s14), 0 }
  0x13   : > { %1313 = sst [smem:[#allocation17_spill]] %s1334_s14  ;;  %p1136_p7 = por %p59_p6, %p58_p4 }
  0x14   : > { %s40_s18 = ssub.s32 %s1023_s11, %s1334_s14  ;;  %s45_s20 = sadd.s32 1, %s1007_s29 }
  0x15   : > { %s42_s19 = sor.u32 %s41_s16, %s40_s18  ;;  %p731_p9 = scmp.ge.s32.totalorder %s1027_s12, 6 }
  0x16   : > { %p43_p8 = scmp.eq.s32.totalorder %s42_s19, 0 }
  0x17   : > { %264 = sbr.rel (%p731_p9) target bundleno = 54 (0x36), region = 40 }
  0x18   : > { %s1144_s21 = scalar_select %p43_p8, %s1007_s29, %s45_s20  }
  0x1a   : > { %1315 = sst [smem:[#allocation18_spill]] %s1144_s21 }
  0x1c   : > { %267 = sbr.rel (!%p54_p5) target bundleno = 54 (0x36), region = 44  ;;  %s268_s22 = sand.u32 (%p54_p5), 1, %s1007_s29  }
  0x1d   : > { %s733_s23 = sshll.u32 (%p54_p5), %s1019_s10, 1  ;;  %s732_s24 = sshll.u32 (%p54_p5), %s268_s22, 6 }
  0x1e   : > { %s274_s25 = ssub.s32 (%p54_p5), 5, %s733_s23  ;;  %s1152_s18 = scalar_lea.sflag (%p54_p5), [#allocation5], %s268_s22 }
  0x1f   : > { %p275_p10 = scmp.lt.s32.totalorder (%p54_p5), %s274_s25, 2  ;;  %s272_s19 = scalar_lea.vmem (%p54_p5), [#allocation4], %s732_s24 }
  0x21   : > { %s1336_s25 = smov (!%p275_p10, %s274_s25), 2 }
  0x22   : > { %s734_s26 = sshll.u32 %s1336_s25, 5 }
  0x23   : > { %s278_s27 = ssub.s32 64, %s734_s26 }
  0x24   : > { %s279_s16 = sshll.u32 %s278_s27, 4 }
  0x25   : > { %280 = vsyncadd %s1152_s18, %s279_s16  ;;  %p1155_p11 = scmp.ne.s32.totalorder %s734_s26, 0  ;;  %s758_s15 = smul.u32 20, %s1023_s11 }
  0x26   : > { %s737_s14 = sshll.u32 %s1336_s25, 3  ;;  %s290_s13 = sshll.u32 %s272_s19, 4  ;;  %s291_s13 = int_to_ptr.vmem [resolvable:$true] %s290_s13 }
  0x27   : > { %s283_s10 = sadd.s32 %s758_s15, %s733_s23  ;;  %s757_s27 = sshll.u32 %s1336_s25, 9 }
  0x28   : > { %s736_s21 = sshll.u32 %s283_s10, 3  ;;  %s860_s8 = sshrl.u32 %s757_s27, 4 }
  0x29   : > { %s285_s24 = scalar_lea.hbm %s1292_s0, %s736_s21  ;;  %s877_s7 = sshra.s32 %s291_s13, 4  ;;  %s878_s7 = int_to_ptr.vmem [resolvable:$true] %s877_s7 }
  0x2a   : > { %s288_s16 = sshll.u32 %s285_s24, 4  ;;  %s884_s26 = scalar_lea.vmem %s878_s7, %s860_s8  ;;  %s289_s16 = int_to_ptr.hbm [resolvable:$true] %s288_s16 }
  0x2b   : > { %p885_p12 = scmp.ne.s32.totalorder %s878_s7, %s884_s26  ;;  %s1029_s11 = smov [#allocation4]  }
  0x2c   : > { %s888_s19 = scalar_lea.vmem %s1029_s11, 128 }
  0x2d   : > { %p886_p13 = pnand %p885_p12, %p1155_p11  ;;  %p890_p1 = scmp.lt.s32.totalorder %s888_s19, %s884_s26 }
  0x2f   : > { %p887_p0 = pneg %p886_p13 }
  0x31   : > { %p892_p2 = pnand %p890_p1, %p887_p0 }
  0x33   : > { %895 = shalt.err (!%p892_p2)
}
  0x34   : > { %s1030_s10 = smov 640   ;;  %s1031_s29 = smov 256  }
  0x35   : > { %296 = dma.hbm_to_vmem [thread:$0]  (%p1155_p11), %s289_s16, %s757_s27, %s291_s13, %s1152_s18, %s1030_s10, %s1031_s29, %s737_s14  }
  0x36 PF: > { %p740_p3 = scmp.ge.s32.totalorder %s1027_s12, 1  ;;  %p298_p4 = scmp.lt.s32.totalorder %s1027_s12, 7 }
  0x38   : > { %p299_p5 = pnand %p740_p3, %p298_p4 }
  0x39   : > { %s304_s7 = sand.u32 (!%p299_p5), 1, %s1003_s28  }
  0x3a   : > { %302 = sbr.rel (%p299_p5) target bundleno = 627 (0x273), region = 48  ;;  %s741_s8 = sshll.u32 (!%p299_p5), %s304_s7, 6 }
  0x3b   : > { %s305_s11 = scalar_lea.sflag (!%p299_p5), [#allocation5], %s304_s7  ;;  %s1173_s15 = scalar_lea.vmem (!%p299_p5), [#allocation4], %s741_s8 }
  0x3f   : > { %986 = dma.done.wait (%p1136_p7), %s305_s11, 1024  }
  0x40   : > { %988 = vsyncadd (%p1136_p7), %s305_s11, 4294966272  ;;  %p742_p6 = scmp.ne.s32.totalorder %s1011_s30, 0 }
  0x42   : > { %345 = sbr.rel (%p742_p6) target bundleno = 76 (0x4c), region = 56 }
  0x47   : > { %v1032_v0 = vmov 0.0  }
  0x48   : > { %346 = vst [vmem:[#allocation2 + $0x10] sm:$0xff] %v1032_v0 }
  0x49   : > { %347 = vst [vmem:[#allocation2] sm:$0xff] %v1032_v0 }
  0x4a   : > { %348 = vst [vmem:[#allocation2 + $0x18] sm:$0xff] %v1032_v0 }
  0x4b   : > { %349 = vst [vmem:[#allocation2 + $0x8] sm:$0xff] %v1032_v0 }
  0x4c PF: > { %p743_p8 = scmp.eq.s32.totalorder %s1011_s30, 2 }
  0x4e   : > { %353 = sbr.rel (%p743_p8) target bundleno = 92 (0x5c), region = 60 }
  0x53   : > { %v354_v1 = vld [vmem:[#allocation2 + $0x10] sm:$0xff]  ;;  %v358_v2 = vld [vmem:[%s1173_s15] sm:$0xff]  ;;  %v356_v6 = vld [vmem:[#allocation2 + $0x18] sm:$0xff] }
  0x54   : > { %v355_v3 = vld [vmem:[#allocation2] sm:$0xff]  ;;  %v362_v4 = vadd.f32 %v358_v2, %v354_v1  ;;  %v359_v5 = vld [vmem:[%s1173_s15 + $0x10] sm:$0xff]  ;;  %v357_v10 = vld [vmem:[#allocation2 + $0x8] sm:$0xff] }
  0x55   : > { %v360_v7 = vld [vmem:[%s1173_s15 + $0x20] sm:$0xff]  ;;  %v363_v8 = vadd.f32 %v359_v5, %v355_v3  ;;  %v361_v11 = vld [vmem:[%s1173_s15 + $0x30] sm:$0xff]  ;;  %v374_v12 = vld [vmem:[%s1173_s15 + $0x8] sm:$0xff] }
  0x56   : > { %v364_v9 = vadd.f32 %v360_v7, %v356_v6  ;;  %v365_v13 = vadd.f32 %v361_v11, %v357_v10  ;;  %v378_v14 = vadd.f32 %v374_v12, %v362_v4  ;;  %v375_v15 = vld [vmem:[%s1173_s15 + $0x18] sm:$0xff]  ;;  %v376_v16 = vld [vmem:[%s1173_s15 + $0x28] sm:$0xff] }
  0x57   : > { %v377_v17 = vld [vmem:[%s1173_s15 + $0x38] sm:$0xff]  ;;  %v379_v18 = vadd.f32 %v375_v15, %v363_v8 }
  0x58   : > { %v380_v19 = vadd.f32 %v376_v16, %v364_v9  ;;  %382 = vst [vmem:[#allocation2 + $0x10] sm:$0xff] %v378_v14  ;;  %v381_v20 = vadd.f32 %v377_v17, %v365_v13 }
  0x59   : > { %383 = vst [vmem:[#allocation2] sm:$0xff] %v379_v18 }
  0x5a   : > { %384 = vst [vmem:[#allocation2 + $0x18] sm:$0xff] %v380_v19 }
  0x5b   : > { %385 = vst [vmem:[#allocation2 + $0x8] sm:$0xff] %v381_v20 }
  0x5c PF: > { %p744_p7 = scmp.ne.s32.totalorder %s1011_s30, 2 }
  0x5d   : > { %s745_s13 = sshll.u32 (!%p744_p7), %s1011_s30, 8  ;;  %s474_s17 = scalar_lea.vmem (!%p744_p7), [#allocation3], %s1015_s9 }
  0x5e   : > { %389 = sbr.rel (%p744_p7) target bundleno = 243 (0xf3), region = 64  ;;  %s420_s14 = sadd.s32 (!%p744_p7), 128, %s745_s13 }
  0x63   : > { %v390_v21 = vlaneseq  ;;  %v397_v22 = vstv %s745_s13  ;;  %v421_v24 = vstv %s420_s14  ;;  %v393_v25 = vld [vmem:[%s1173_s15] sm:$0xff]  ;;  %v416_v27 = vld [vmem:[%s1173_s15 + $0x8] sm:$0xff]  ;;  %v402_v32 = vld [vmem:[#allocation2 + $0x18] sm:$0xff]  ;;  %vm463_vm2 = vcmask 130112  }
  0x64   : > { %v395_v29 = vld [vmem:[%s1173_s15 + $0x20] sm:$0xff]  ;;  %v418_v30 = vld [vmem:[%s1173_s15 + $0x28] sm:$0xff]  ;;  %v394_v33 = vld [vmem:[%s1173_s15 + $0x10] sm:$0xff]  ;;  %vm467_vm3 = vcmask 195712   ;;  %vm471_vm4 = vcmask 261312   ;;  %vm475_vm5 = vcmask 253952  }
  0x65   : > { %v391_v23 = vand.u32 127, %v390_v21  ;;  %v400_v31 = vld [vmem:[#allocation2 + $0x10] sm:$0xff]  ;;  %v401_v34 = vld [vmem:[#allocation2] sm:$0xff]  ;;  %v403_v41 = vld [vmem:[#allocation2 + $0x8] sm:$0xff] }
  0x66   : > { %v417_v35 = vld [vmem:[%s1173_s15 + $0x18] sm:$0xff]  ;;  %v396_v36 = vld [vmem:[%s1173_s15 + $0x30] sm:$0xff] }
  0x67   : > { %v398_v26 = vadd.s32 %v397_v22, %v391_v23  ;;  %v422_v28 = vadd.s32 %v421_v24, %v391_v23  ;;  %v419_v42 = vld [vmem:[%s1173_s15 + $0x38] sm:$0xff]  ;;  %v461_v58 = vadd.s32 4294967288, %v391_v23  ;;  %v469_v59 = vadd.s32 4294967272, %v391_v23 }
  0x68   : > { %v465_v60 = vadd.s32 4294967280, %v391_v23 }
  0x69   : > { %vm399_vm0 = vcmp.lt.s32.totalorder %v398_v26, 520  ;;  %vm423_vm1 = vcmp.lt.s32.totalorder %v422_v28, 520 }
  0x6a   : > { %v404_v37 = vsel %vm399_vm0, %v393_v25, 0.0  ;;  %v428_v38 = vsel %vm423_vm1, %v416_v27, 0.0  ;;  %v406_v39 = vsel %vm399_vm0, %v395_v29, 0.0  ;;  %v430_v40 = vsel %vm423_vm1, %v418_v30, 0.0 }
  0x6b   : > { %v408_v43 = vadd.f32 %v404_v37, %v400_v31  ;;  %v410_v44 = vadd.f32 %v406_v39, %v402_v32  ;;  %v405_v45 = vsel %vm399_vm0, %v394_v33, 0.0  ;;  %v429_v47 = vsel %vm423_vm1, %v417_v35, 0.0 }
  0x6c   : > { %v409_v46 = vadd.f32 %v405_v45, %v401_v34  ;;  %v407_v48 = vsel %vm399_vm0, %v396_v36, 0.0  ;;  %v431_v52 = vsel %vm423_vm1, %v419_v42, 0.0 }
  0x6d   : > { %v432_v49 = vadd.f32 %v428_v38, %v408_v43  ;;  %v434_v50 = vadd.f32 %v430_v40, %v410_v44  ;;  %v411_v51 = vadd.f32 %v407_v48, %v403_v41 }
  0x6e   : > { %v433_v53 = vadd.f32 %v429_v47, %v409_v46 }
  0x6f   : > { %436 = vst [vmem:[#allocation2 + $0x10] sm:$0xff] %v432_v49  ;;  %444 = vadd.xlane.f32.xlu0 %v432_v49  ;;  %448 = vadd.xlane.f32.xlu1 %v434_v50  ;;  %v435_v54 = vadd.f32 %v431_v52, %v411_v51 }
  0x70   : > { %438 = vst [vmem:[#allocation2 + $0x18] sm:$0xff] %v434_v50 }
  0x71   : > { %437 = vst [vmem:[#allocation2] sm:$0xff] %v433_v53 }
  0x72   : > { %439 = vst [vmem:[#allocation2 + $0x8] sm:$0xff] %v435_v54 }
  0x77   : > { %446 = vadd.xlane.f32.xlu0 %v433_v53  ;;  %450 = vadd.xlane.f32.xlu1 %v435_v54 }
  0xe2   : > { %v445_v55 = vpop.xlane.xlu0 %444  ;;  %v449_v56 = vpop.xlane.xlu1 %448 }
  0xe3   : > { %v452_v57 = vmul.f32 0.0019230769, %v445_v55  ;;  %v454_v61 = vmul.f32 0.0019230769, %v449_v56 }
  0xe5   : > { %v460_v2 = vperm.slane %v452_v57, %v391_v23  ;;  %v466_v5 = vperm.slane %v454_v61, %v465_v60 }
  0xea   : > { %v447_v62 = vpop.xlane.xlu0 %446  ;;  %v451_v63 = vpop.xlane.xlu1 %450 }
  0xeb   : > { %v453_v0 = vmul.f32 0.0019230769, %v447_v62  ;;  %v455_v1 = vmul.f32 0.0019230769, %v451_v63 }
  0xed   : > { %v462_v3 = vperm.slane %v453_v0, %v461_v58  ;;  %v470_v4 = vperm.slane %v455_v1, %v469_v59 }
  0xef   : > { %v464_v6 = vsel %vm463_vm2, %v462_v3, %v460_v2 }
  0xf0   : > { %v468_v7 = vsel %vm467_vm3, %v466_v5, %v464_v6 }
  0xf1   : > { %v472_v8 = vsel %vm471_vm4, %v470_v4, %v468_v7 }
  0xf2   : > { %476 = vst.msk [vmem:[%s474_s17] sm:$0x1] %vm475_vm5, %v472_v8 }
  0xf3 PF: > { %p477_p9 = scmp.eq.s32.totalorder %s1015_s9, 1 }
  0xf5   : > { %p478_p10 = pnand %p743_p8, %p477_p9 }
  0xf7   : > { %481 = sbr.rel (%p478_p10) target bundleno = 612 (0x264), region = 68 }
  0xfc   : > { %v487_v9 = vld [vmem:[%s1293_s1 + $0x18] sm:$0xff]  ;;  %v486_v10 = vld [vmem:[%s1293_s1 + $0x10] sm:$0xff]  ;;  %v485_v11 = vld [vmem:[%s1293_s1 + $0x8] sm:$0xff]  ;;  %vm494_vm6 = vcmask 261120   ;;  %v1033_v16 = vmov 2.0   ;;  %vm517_vm7 = vcmask 58368  }
  0xfd   : > { %509 = vmatpush.msra.mxu0 %v487_v9  ;;  %v482_v12 = vld [vmem:[#allocation3] sm:$0x1]  ;;  %v483_v13 = vld [vmem:[#allocation3 + $0x1] sm:$0x1]  ;;  %v484_v14 = vld [vmem:[%s1293_s1] sm:$0xff]  ;;  %846 = vrcp.f32 %v1033_v16  ;;  %vm571_vm12 = vcmask 64512  }
  0xfe   : > { %490 = vst [vmem:[#allocation1] ss:$9 sm:$0xff] %v482_v12  ;;  %v566_v37 = vld [vmem:[%s1296_s4] sm:$0xff] }
  0xff   : > { %510 = vmatpush.msra.mxu0 %v486_v10  ;;  %492 = vst [vmem:[#allocation1 + $0x1] ss:$9 sm:$0xff] %v483_v13  ;;  %590 = vmatpush.msra.mxu1 %v566_v37  ;;  %v843_v48 = vld [vmem:[%s1294_s2] ss:$0 sm:$0xff] }
 0x100   : > { %v844_v52 = vld [vmem:[%s1295_s3] ss:$0 sm:$0xff] }
 0x101   : > { %511 = vmatpush.msra.mxu0 %v485_v11  ;;  %v595_v57 = vld [vmem:[%s1298_s6] sm:$0x3] }
 0x102   : > { %v599_v58 = vsub.f32 1.0, %v595_v57  ;;  %v596_v59 = vadd.f32 1e-08, %v595_v57  ;;  %v845_v1 = vld [vmem:[%s1297_s5] ss:$0 sm:$0xff] }
 0x103   : > { %512 = vmatpush.msra.mxu0 %v484_v14  ;;  %v847_v17 = vpop.eup %846 }
 0x104   : > { %v526_v18 = vmul.f32 2.0, %v847_v17  ;;  %vm530_vm8 = vweird.f32 %v847_v17  ;;  %v600_v60 = vadd.f32 1e-08, %v599_v58 }
 0x106   : > { %v493_v15 = vld [vmem:[#allocation1] sm:$0xff]  ;;  %v527_v19 = vsub.f32 1.0, %v526_v18 }
 0x107   : > { %746 = vmatmul.msk.f32.vlgmr.msra.gmra.mxu0 %vm494_vm6, %v493_v15 }
 0x108   : > { %v528_v23 = vmul.f32 %v847_v17, %v527_v19 }
 0x10a   : > { %v529_v26 = vadd.f32 %v847_v17, %v528_v23 }
 0x10c   : > { %v531_v29 = vsel %vm530_vm8, %v847_v17, %v529_v26 }
 0x184   : > { %v514_v20 = vpop.f32.mrf.mxu0 }
 0x185   : > { %v518_v21 = vsel %vm517_vm7, %v514_v20, 0.0 }
 0x186   : > { %v519_v22 = vrot.slane %v518_v21, 4 }
 0x188   : > { %v520_v24 = vadd.f32 %v519_v22, %v518_v21 }
 0x18a   : > { %v521_v25 = vrot.slane %v520_v24, 2 }
 0x18c   : > { %v522_v27 = vadd.f32 %v521_v25, %v520_v24 }
 0x18e   : > { %v523_v28 = vrot.slane %v522_v27, 1 }
 0x190   : > { %v524_v30 = vadd.f32 %v523_v28, %v522_v27 }
 0x192   : > { %v532_v31 = vmul.f32 %v531_v29, %v524_v30 }
 0x194   : > { %v533_v32 = vsub.f32 %v514_v20, %v532_v31  ;;  %v1034_v20 = vmov 0.0  }
 0x196   : > { %v534_v33 = vmul.f32 %v533_v32, %v533_v32  ;;  %v547_v51 = vmul.f32 %v843_v48, %v533_v32 }
 0x198   : > { %v535_v34 = vsel %vm517_vm7, %v534_v33, 0.0 }
 0x199   : > { %v536_v35 = vrot.slane %v535_v34, 4 }
 0x19b   : > { %v537_v36 = vadd.f32 %v536_v35, %v535_v34 }
 0x19d   : > { %v538_v38 = vrot.slane %v537_v36, 2 }
 0x19f   : > { %v539_v39 = vadd.f32 %v538_v38, %v537_v36 }
 0x1a1   : > { %v540_v40 = vrot.slane %v539_v39, 1 }
 0x1a3   : > { %v541_v41 = vadd.f32 %v540_v40, %v539_v39 }
 0x1a5   : > { %v542_v42 = vmul.f32 %v541_v41, %v531_v29 }
 0x1a7   : > { %v548_v43 = vadd.f32 1e-05, %v542_v42 }
 0x1a9   : > { %848 = vrsqrt.f32 %v548_v43  ;;  %vm555_vm10 = vweird.f32 %v548_v43 }
 0x1aa   : > { %850 = vlog2.f32 %v596_v59 }
 0x1ab   : > { %852 = vlog2.f32 %v600_v60 }
 0x1af   : > { %v849_v44 = vpop.eup %848 }
 0x1b0   : > { %v550_v45 = vmul.f32 %v849_v44, %v548_v43  ;;  %vm556_vm9 = vweird.f32 %v849_v44  ;;  %v851_v61 = vpop.eup %850 }
 0x1b1   : > { %vm557_vm11 = vmor %vm555_vm10, %vm556_vm9  ;;  %v853_v62 = vpop.eup %852  ;;  %v598_v63 = vmul.f32 0.6931472, %v851_v61 }
 0x1b2   : > { %v551_v46 = vmul.f32 %v849_v44, %v550_v45  ;;  %v602_v0 = vmul.f32 0.6931472, %v853_v62 }
 0x1b4   : > { %v552_v47 = vmul.f32 0.5, %v551_v46  ;;  %v603_v2 = vsub.f32 %v598_v63, %v602_v0 }
 0x1b6   : > { %v553_v49 = vsub.f32 1.5, %v552_v47 }
 0x1b8   : > { %v554_v50 = vmul.f32 %v849_v44, %v553_v49 }
 0x1ba   : > { %v558_v53 = vsel %vm557_vm11, %v849_v44, %v554_v50 }
 0x1bb   : > { %v559_v54 = vmul.f32 %v558_v53, %v547_v51 }
 0x1bd   : > { %v564_v55 = vadd.f32 %v844_v52, %v559_v54 }
 0x1bf   : > { %v565_v56 = vmax.f32 %v564_v55, 0.0 }
 0x1c1   : > { %747 = vmatmul.msk.f32.vlgmr.msra.gmra.mxu1 %vm571_vm12, %v565_v56 }
 0x23e   : > { %v592_v3 = vpop.f32.mrf.mxu1 }
 0x23f   : > { %v593_v4 = vadd.f32 %v845_v1, %v592_v3 }
 0x241   : > { %v604_v5 = vadd.f32 %v603_v2, %v593_v4 }
 0x243   : > { %v748_v6 = vmul.f32 -1.4999925, %v604_v5 }
 0x245   : > { %v607_v7 = vmul.f32 1.442695, %v748_v6 }
 0x247   : > { %854 = vpow2.f32 %v607_v7 }
 0x24d   : > { %v855_v8 = vpop.eup %854 }
 0x24e   : > { %v609_v9 = vadd.f32 1.0, %v855_v8 }
 0x250   : > { %856 = vrcp.f32 %v609_v9  ;;  %v621_v13 = vand.u32 2147483648, %v609_v9  ;;  %v619_v15 = vand.u32 2147483647, %v609_v9  ;;  %vm615_vm14 = vweird.f32 %v609_v9 }
 0x252   : > { %v622_v17 = vor.u32 1.1754944e-38, %v621_v13  ;;  %vm620_vm0 = vcmp.eq.f32.partialorder %v619_v15, 8.507059e+37 }
 0x256   : > { %v857_v10 = vpop.eup %856 }
 0x257   : > { %v611_v11 = vmul.f32 %v857_v10, %v609_v9  ;;  %vm616_vm13 = vweird.f32 %v857_v10 }
 0x258   : > { %vm617_vm15 = vmor %vm615_vm14, %vm616_vm13 }
 0x259   : > { %v612_v12 = vsub.f32 1.0, %v611_v11 }
 0x25b   : > { %v613_v14 = vmul.f32 %v857_v10, %v612_v12 }
 0x25d   : > { %v614_v16 = vadd.f32 %v857_v10, %v613_v14 }
 0x25f   : > { %v618_v18 = vsel %vm617_vm15, %v857_v10, %v614_v16 }
 0x260   : > { %v623_v19 = vsel %vm620_vm0, %v622_v17, %v618_v18 }
 0x261   : > { %vm625_vm1 = vcmp.ge.f32.partialorder %v623_v19, 0.5  ;;  %629 = vst.msk [vmem:[#allocation8] sm:$0x3] %vm517_vm7, %v623_v19 }
 0x262   : > { %v749_v21 = vsel %vm625_vm1, 1.0, %v1034_v20 }
 0x263   : > { %628 = vst.msk [vmem:[#allocation7] sm:$0x3] %vm517_vm7, %v749_v21 }
 0x264 PF: > { %s1317_s15 = sadd.s32 4294967295, %s1027_s12   ;;  %s1319_s21 = sld [smem:[#allocation19_spill]] }
 0x265   : > { %p1246_p11 = scmp.eq.s32.totalorder %s1317_s15, 5  ;;  %s1035_s25 = smov [#allocation7]  }
 0x266   : > { %s636_s18 = sshll.u32 %s1035_s25, 4  ;;  %s1036_s20 = smov [#allocation8]   ;;  %s637_s18 = int_to_ptr.vmem [resolvable:$true] %s636_s18 }
 0x267   : > { %s648_s27 = sshll.u32 %s1036_s20, 4  ;;  %s1320_s22 = sld [smem:[#allocation20_spill]]  ;;  %s649_s27 = int_to_ptr.vmem [resolvable:$true] %s648_s27 }
 0x26a   : > { %s638_s23 = sshll.u32 %s1319_s21, 4  ;;  %s639_s23 = int_to_ptr.hbm [resolvable:$true] %s638_s23 }
 0x26b   : > { %761 = dma.vmem_to_hbm [thread:$0]  (%p1246_p11), %s637_s18, 32, %s639_s23, [#allocation6]  }
 0x26d   : > { %s650_s24 = sshll.u32 %s1320_s22, 4  ;;  %s651_s24 = int_to_ptr.hbm [resolvable:$true] %s650_s24 }
 0x26e   : > { %763 = dma.vmem_to_hbm [thread:$0]  (%p1246_p11), %s649_s27, 32, %s651_s24, [#allocation9]  }
 0x26f   : > { %990 = dma.done.wait (%p1246_p11), [#allocation6], 32  }
 0x270   : > { %992 = vsyncadd (%p1246_p11), [#allocation6], 4294967264 }
 0x271   : > { %994 = dma.done.wait (%p1246_p11), [#allocation9], 32  }
 0x272   : > { %996 = vsyncadd (%p1246_p11), [#allocation9], 4294967264 }
 0x273 PF: > { %s24_s12 = sadd.s32 1, %s1027_s12   ;;  %s1321_s16 = sld [smem:[#allocation13_spill]] }
 0x274   : > { %p21_p12 = scmp.ge.s32.totalorder %s24_s12, 8   ;;  %s1322_s29 = sld [smem:[#allocation18_spill]] }
 0x275   : > { %s1323_s30 = sld [smem:[#allocation14_spill]]  ;;  %s1327_s27 = smov %s1003_s28 }
 0x276   : > { %s1324_s9 = sld [smem:[#allocation15_spill]]  ;;  %23 = sbr.rel (!%p21_p12) target bundleno = 10 (0xa), region = 111 }
 0x277   : > { %s1325_s10 = sld [smem:[#allocation16_spill]] }
 0x278   : > { %s1326_s11 = sld [smem:[#allocation17_spill]] }
 0x279   : > { %s1328_s28 = smov %s1321_s16 }
 0x27b   :  { %669 = vsyncpa [#allocation5], 1 }
 0x27c   :  { %671 = vsyncpa [#allocation5 + $0x1], 1 }
 0x27d   :  { %672 = vsyncpa [#allocation6], 1 }
 0x27e   :  { %674 = vsyncpa [#allocation6 + $0x1], 1 }
 0x27f   :  { %675 = vsyncpa [#allocation9], 1 }

</bundles_post_ra>
